<compile_context>
chip_gen: v6e
topology: v6e:2x2x1
jax: 0.10.0
libtpu: 0.0.40
codegen_flags: <defaults>
</compile_context>

<pallas_src>
import functools

import jax
import jax.numpy as jnp
from jax.experimental import pallas as pl
from jax.experimental.pallas import tpu as pltpu


# ----------------------------------------------------------------------------
# Kernels
# ----------------------------------------------------------------------------

def _fr_kernel(x_ref, w_ref, b_ref, g_ref, beta_ref, o_ref, *, do_ln, eps):
    """Fused Linear + bias + LayerNorm, whole K (=C1) in one step."""
    y = jnp.dot(x_ref[...], w_ref[...], preferred_element_type=jnp.float32)
    y = y + b_ref[...].astype(jnp.float32)
    if do_ln:
        mean = jnp.mean(y, axis=-1, keepdims=True)
        c = y - mean
        var = jnp.mean(c * c, axis=-1, keepdims=True)
        y = c * jax.lax.rsqrt(var + eps)
        y = y * g_ref[...].astype(jnp.float32) + beta_ref[...].astype(jnp.float32)
    o_ref[...] = y.astype(o_ref.dtype)           # dropout = identity (eval)


def _fr_kernel_ktiled(x_ref, w_ref, b_ref, g_ref, beta_ref, o_ref, acc_ref, *,
                      do_ln, eps):
    """K-tiled variant: accumulate partial matmuls in f32 VMEM scratch, finalize at last k."""
    k = pl.program_id(1)

    @pl.when(k == 0)
    def _():
        acc_ref[...] = jnp.zeros_like(acc_ref)

    acc_ref[...] += jnp.dot(x_ref[...], w_ref[...],
                            preferred_element_type=jnp.float32)

    @pl.when(k == pl.num_programs(1) - 1)
    def _():
        y = acc_ref[...] + b_ref[...].astype(jnp.float32)
        if do_ln:
            mean = jnp.mean(y, axis=-1, keepdims=True)
            c = y - mean
            var = jnp.mean(c * c, axis=-1, keepdims=True)
            y = c * jax.lax.rsqrt(var + eps)
            y = y * g_ref[...].astype(jnp.float32) + beta_ref[...].astype(jnp.float32)
        o_ref[...] = y.astype(o_ref.dtype)


# ----------------------------------------------------------------------------
# Wrapper
# ----------------------------------------------------------------------------

def _round_up(a, m):
    return ((a + m - 1) // m) * m


def _sublane_multiple(dtype):
    """Packing-friendly row multiple: 8 (f32), 16 (bf16), 32 (int8/fp8)."""
    return max(8, 32 // jnp.dtype(dtype).itemsize)


def feature_resizer(x, w, b, gamma, beta, *, do_ln=True, eps=1e-12,
                    block_rows=512, vmem_budget_bytes=None):
    """x: (..., C1), w: (C1, C2), b/gamma/beta: (C2,) -> (..., C2)."""
    orig_lead = x.shape[:-1]
    C1 = x.shape[-1]
    C2 = w.shape[1]

    N = 1
    for d in orig_lead:
        N *= d
    x2 = x.reshape(N, C1)
    out_dtype = x.dtype

    x_bytes = jnp.dtype(x.dtype).itemsize
    w_bytes = jnp.dtype(w.dtype).itemsize
    o_bytes = jnp.dtype(out_dtype).itemsize

    mult = _sublane_multiple(x.dtype)
    br = max(mult, min(block_rows, _round_up(N, mult)))
    br = _round_up(br, mult)

    # ---- VMEM budgeting (per-TC; v7x has 64 MiB, so target ~48 MiB) -------------
    if vmem_budget_bytes is None:
        vmem_budget_bytes = 48 * 1024 * 1024

    def _footprint(br_, tk_, n_w_buf):
        return (n_w_buf * tk_ * C2 * w_bytes        # weight buffer(s)
                + 2 * br_ * tk_ * x_bytes           # x tiles (double buffered)
                + 2 * br_ * C2 * o_bytes            # out tiles (double buffered)
                + br_ * C2 * 4                      # f32 accumulator / temporaries
                + 3 * 2 * C2 * 4)                   # bias / gamma / beta

    use_k_tiling = _footprint(br, C1, 1) > vmem_budget_bytes
    tk = C1
    if use_k_tiling:
        for cand in (1024, 512, 256, 128):          # clean divisors only: no ragged K
            if cand < C1 and C1 % cand == 0:
                tk = cand
                break
        if tk == C1:
            use_k_tiling = False                    # no clean K tile; keep weight resident
        else:
            while _footprint(br, tk, 2) > vmem_budget_bytes and br > mult:
                br = max(mult, _round_up(br // 2, mult))

    fp = _footprint(br, tk if use_k_tiling else C1, 2)
    vmem_limit = int(min(max(2 * fp + (4 << 20), 32 << 20), 64 << 20))

    cost = pl.CostEstimate(
        flops=2 * N * C1 * C2 + (10 * N * C2 if do_ln else 0),
        bytes_accessed=(N * C1 * x_bytes + C1 * C2 * w_bytes
                        + N * C2 * o_bytes + 3 * C2 * 4),
        transcendentals=N if do_ln else 0,
    )

    b2 = b.reshape(1, C2)
    g2 = gamma.reshape(1, C2)
    beta2 = beta.reshape(1, C2)

    def _call(single_buffer_params):
        # Constant-index parameters don't need a revolving second buffer.
        pm = {"pipeline_mode": pl.Buffered(1)} if single_buffer_params else {}

        if not use_k_tiling:
            grid = (pl.cdiv(N, br),)
            in_specs = [
                pl.BlockSpec((br, C1), lambda i: (i, 0)),        # activations (row tiled)
                pl.BlockSpec((C1, C2), lambda i: (0, 0), **pm),  # weight (VMEM resident)
                pl.BlockSpec((1, C2), lambda i: (0, 0), **pm),   # bias
                pl.BlockSpec((1, C2), lambda i: (0, 0), **pm),   # LN gamma
                pl.BlockSpec((1, C2), lambda i: (0, 0), **pm),   # LN beta
            ]
            out_specs = pl.BlockSpec((br, C2), lambda i: (i, 0))
            kernel = functools.partial(_fr_kernel, do_ln=do_ln, eps=eps)
            scratch = ()
            dims = ("parallel",)
        else:
            grid = (pl.cdiv(N, br), C1 // tk)
            in_specs = [
                pl.BlockSpec((br, tk), lambda i, k: (i, k)),
                pl.BlockSpec((tk, C2), lambda i, k: (k, 0)),
                pl.BlockSpec((1, C2), lambda i, k: (0, 0), **pm),
                pl.BlockSpec((1, C2), lambda i, k: (0, 0), **pm),
                pl.BlockSpec((1, C2), lambda i, k: (0, 0), **pm),
            ]
            out_specs = pl.BlockSpec((br, C2), lambda i, k: (i, 0))
            kernel = functools.partial(_fr_kernel_ktiled, do_ln=do_ln, eps=eps)
            scratch = (pltpu.VMEM((br, C2), jnp.float32),)
            dims = ("parallel", "arbitrary")

        return pl.pallas_call(
            kernel,
            grid=grid,
            in_specs=in_specs,
            out_specs=out_specs,
            out_shape=jax.ShapeDtypeStruct((N, C2), out_dtype),
            scratch_shapes=scratch,
            compiler_params=pltpu.CompilerParams(
                dimension_semantics=dims,
                vmem_limit_bytes=vmem_limit),
            cost_estimate=cost,
        )(x2, w, b2, g2, beta2)

    try:
        out = _call(True)
    except Exception:
        # Installed Pallas may not accept Buffered(1) on a pallas_call BlockSpec;
        # semantics are identical with default double-buffering.
        out = _call(False)

    return out.reshape(orig_lead + (C2,))


# ----------------------------------------------------------------------------
# Pure-JAX reference (for correctness check)
# ----------------------------------------------------------------------------

def feature_resizer_ref(x, w, b, gamma, beta, *, do_ln=True, eps=1e-12):
    y = x @ w + b
    if do_ln:
        mean = y.mean(-1, keepdims=True)
        var = ((y - mean) ** 2).mean(-1, keepdims=True)
        y = (y - mean) / jnp.sqrt(var + eps) * gamma + beta
    return y


# ----------------------------------------------------------------------------
# Main
# ----------------------------------------------------------------------------

if __name__ == "__main__":
    root = jax.random.PRNGKey(0)
    kx, kw, kb, kg, kbeta, kx2 = jax.random.split(root, 6)

    # Small but model-consistent dims (octobert's resizer is 768 -> 256); multiples of
    # 128 keep the output lane-dense and the MXU/VPU fully occupied.
    B, T, C1, C2 = 2, 8, 256, 128

    x = jax.random.normal(kx, (B, T, C1), jnp.float32)
    w = jax.random.normal(kw, (C1, C2), jnp.float32) * 0.02
    b = jax.random.normal(kb, (C2,), jnp.float32) * 0.02
    gamma = 1.0 + 0.1 * jax.random.normal(kg, (C2,), jnp.float32)
    beta = 0.1 * jax.random.normal(kbeta, (C2,), jnp.float32)

    # 1) Resident-weight fused path (LayerNorm on).
    out = jax.block_until_ready(feature_resizer(x, w, b, gamma, beta, do_ln=True))
    ref = feature_resizer_ref(x, w, b, gamma, beta, do_ln=True)
    assert out.shape == (B, T, C2), out.shape
    assert bool(jnp.all(jnp.isfinite(out)))
    assert bool(jnp.allclose(out, ref, atol=1e-4, rtol=1e-4)), \
        float(jnp.max(jnp.abs(out - ref)))

    # 2) do_ln=False branch (Linear + dropout-identity only).
    out_noln = jax.block_until_ready(feature_resizer(x, w, b, gamma, beta, do_ln=False))
    ref_noln = feature_resizer_ref(x, w, b, gamma, beta, do_ln=False)
    assert bool(jnp.allclose(out_noln, ref_noln, atol=1e-4, rtol=1e-4)), \
        float(jnp.max(jnp.abs(out_noln - ref_noln)))

    # 3) K-tiled accumulator path (forced via tiny VMEM budget) with a ragged last
    #    row block (N=44 not a multiple of the row tile), exercising masked stores.
    x_big = jax.random.normal(kx2, (2, 22, C1), jnp.float32)
    out_k = jax.block_until_ready(
        feature_resizer(x_big, w, b, gamma, beta, do_ln=True,
                        block_rows=16, vmem_budget_bytes=1))
    ref_k = feature_resizer_ref(x_big, w, b, gamma, beta, do_ln=True)
    assert out_k.shape == (2, 22, C2), out_k.shape
    assert bool(jnp.all(jnp.isfinite(out_k)))
    assert bool(jnp.allclose(out_k, ref_k, atol=1e-4, rtol=1e-4)), \
        float(jnp.max(jnp.abs(out_k - ref_k)))

    print("KERNEL_OK")
</pallas_src>

<mosaic_0001>
module attributes {stable_mosaic.version = 11 : i64} {
  func.func @_fr_kernel(%arg0: i32, %arg1: memref<16x256xf32, #tpu.memory_space<vmem>>, %arg2: memref<256x128xf32, #tpu.memory_space<vmem>>, %arg3: memref<1x128xf32, #tpu.memory_space<vmem>>, %arg4: memref<1x128xf32, #tpu.memory_space<vmem>>, %arg5: memref<1x128xf32, #tpu.memory_space<vmem>>, %arg6: memref<16x128xf32, #tpu.memory_space<vmem>>) attributes {dimension_semantics = [#tpu.dimension_semantics<parallel>], iteration_bounds = array<i64: 1>, scalar_prefetch = 0 : i64, scratch_operands = 0 : i64, tpu.core_type = #tpu.core_type<tc>, window_params = [{transform_indices = @transform_0, window_bounds = array<i64: 16, 256>}, {pipeline_mode = #tpu.pipeline_mode<synchronous>, transform_indices = @transform_1, window_bounds = array<i64: 256, 128>}, {pipeline_mode = #tpu.pipeline_mode<synchronous>, transform_indices = @transform_2, window_bounds = array<i64: 1, 128>}, {pipeline_mode = #tpu.pipeline_mode<synchronous>, transform_indices = @transform_3, window_bounds = array<i64: 1, 128>}, {pipeline_mode = #tpu.pipeline_mode<synchronous>, transform_indices = @transform_4, window_bounds = array<i64: 1, 128>}, {transform_indices = @transform_5, window_bounds = array<i64: 16, 128>}]} {
    %c0 = arith.constant 0 : index
    %c0_0 = arith.constant 0 : index
    %0 = vector.load %arg1[%c0, %c0_0] : memref<16x256xf32, #tpu.memory_space<vmem>>, vector<16x256xf32>
    %c0_1 = arith.constant 0 : index
    %c0_2 = arith.constant 0 : index
    %1 = vector.load %arg2[%c0_1, %c0_2] : memref<256x128xf32, #tpu.memory_space<vmem>>, vector<256x128xf32>
    %cst = arith.constant dense<0.000000e+00> : vector<16x128xf32>
    %2 = tpu.matmul %0, %1, %cst {dimension_numbers = #tpu.dot_dimension_numbers<[1], [0], [0], [1], [0, 0, 1, 1], [], []>} : vector<16x256xf32>, vector<256x128xf32>, vector<16x128xf32> -> vector<16x128xf32>
    %c0_3 = arith.constant 0 : index
    %c0_4 = arith.constant 0 : index
    %3 = vector.load %arg3[%c0_3, %c0_4] : memref<1x128xf32, #tpu.memory_space<vmem>>, vector<1x128xf32>
    %4 = vector.broadcast %3 : vector<1x128xf32> to vector<16x128xf32>
    %5 = arith.addf %2, %4 : vector<16x128xf32>
    %cst_5 = arith.constant dense<0.000000e+00> : vector<16xf32>
    %6 = vector.multi_reduction <add>, %5, %cst_5 [1] : vector<16x128xf32> to vector<16xf32>
    %7 = vector.shape_cast %6 : vector<16xf32> to vector<16x1xf32>
    %cst_6 = arith.constant 1.280000e+02 : f32
    %8 = vector.broadcast %cst_6 : f32 to vector<16x1xf32>
    %9 = arith.divf %7, %8 : vector<16x1xf32>
    %10 = vector.broadcast %9 : vector<16x1xf32> to vector<16x128xf32>
    %11 = arith.subf %5, %10 : vector<16x128xf32>
    %12 = arith.mulf %11, %11 : vector<16x128xf32>
    %cst_7 = arith.constant dense<0.000000e+00> : vector<16xf32>
    %13 = vector.multi_reduction <add>, %12, %cst_7 [1] : vector<16x128xf32> to vector<16xf32>
    %14 = vector.shape_cast %13 : vector<16xf32> to vector<16x1xf32>
    %cst_8 = arith.constant 1.280000e+02 : f32
    %15 = vector.broadcast %cst_8 : f32 to vector<16x1xf32>
    %16 = arith.divf %14, %15 : vector<16x1xf32>
    %cst_9 = arith.constant 9.99999996E-13 : f32
    %17 = vector.broadcast %cst_9 : f32 to vector<16x1xf32>
    %18 = arith.addf %16, %17 : vector<16x1xf32>
    %19 = math.rsqrt %18 : vector<16x1xf32>
    %20 = vector.broadcast %19 : vector<16x1xf32> to vector<16x128xf32>
    %21 = arith.mulf %11, %20 : vector<16x128xf32>
    %c0_10 = arith.constant 0 : index
    %c0_11 = arith.constant 0 : index
    %22 = vector.load %arg4[%c0_10, %c0_11] : memref<1x128xf32, #tpu.memory_space<vmem>>, vector<1x128xf32>
    %23 = vector.broadcast %22 : vector<1x128xf32> to vector<16x128xf32>
    %24 = arith.mulf %21, %23 : vector<16x128xf32>
    %c0_12 = arith.constant 0 : index
    %c0_13 = arith.constant 0 : index
    %25 = vector.load %arg5[%c0_12, %c0_13] : memref<1x128xf32, #tpu.memory_space<vmem>>, vector<1x128xf32>
    %26 = vector.broadcast %25 : vector<1x128xf32> to vector<16x128xf32>
    %27 = arith.addf %24, %26 : vector<16x128xf32>
    %c0_14 = arith.constant 0 : index
    %c0_15 = arith.constant 0 : index
    %28 = vector.load %arg6[%c0_14, %c0_15] : memref<16x128xf32, #tpu.memory_space<vmem>>, vector<16x128xf32>
    tpu.vector_store %arg6[%c0_14, %c0_15], %27 {strides = array<i32>} : memref<16x128xf32, #tpu.memory_space<vmem>>, vector<16x128xf32>,
    return
  }
  func.func @transform_0(%arg0: i32) -> (i32, i32) {
    %c0_i32 = arith.constant 0 : i32
    %c0_i32_0 = arith.constant 0 : i32
    return %arg0, %c0_i32 : i32, i32
  }
  func.func @transform_1(%arg0: i32) -> (i32, i32) {
    %c0_i32 = arith.constant 0 : i32
    %c0_i32_0 = arith.constant 0 : i32
    %c0_i32_1 = arith.constant 0 : i32
    return %c0_i32, %c0_i32_0 : i32, i32
  }
  func.func @transform_2(%arg0: i32) -> (i32, i32) {
    %c0_i32 = arith.constant 0 : i32
    %c0_i32_0 = arith.constant 0 : i32
    %c0_i32_1 = arith.constant 0 : i32
    return %c0_i32, %c0_i32_0 : i32, i32
  }
  func.func @transform_3(%arg0: i32) -> (i32, i32) {
    %c0_i32 = arith.constant 0 : i32
    %c0_i32_0 = arith.constant 0 : i32
    %c0_i32_1 = arith.constant 0 : i32
    return %c0_i32, %c0_i32_0 : i32, i32
  }
  func.func @transform_4(%arg0: i32) -> (i32, i32) {
    %c0_i32 = arith.constant 0 : i32
    %c0_i32_0 = arith.constant 0 : i32
    %c0_i32_1 = arith.constant 0 : i32
    return %c0_i32, %c0_i32_0 : i32, i32
  }
  func.func @transform_5(%arg0: i32) -> (i32, i32) {
    %c0_i32 = arith.constant 0 : i32
    %c0_i32_0 = arith.constant 0 : i32
    return %arg0, %c0_i32 : i32, i32
  }
}

module attributes {stable_mosaic.version = 11 : i64} {
  func.func @_fr_kernel(%arg0: i32, %arg1: memref<16x256xf32, #tpu.memory_space<vmem>>, %arg2: memref<256x128xf32, #tpu.memory_space<vmem>>, %arg3: memref<1x128xf32, #tpu.memory_space<vmem>>, %arg4: memref<1x128xf32, #tpu.memory_space<vmem>>, %arg5: memref<1x128xf32, #tpu.memory_space<vmem>>, %arg6: memref<16x128xf32, #tpu.memory_space<vmem>>) attributes {dimension_semantics = [#tpu.dimension_semantics<parallel>], iteration_bounds = array<i64: 1>, scalar_prefetch = 0 : i64, scratch_operands = 0 : i64, tpu.core_type = #tpu.core_type<tc>, window_params = [{transform_indices = @transform_0, window_bounds = array<i64: 16, 256>}, {pipeline_mode = #tpu.pipeline_mode<synchronous>, transform_indices = @transform_1, window_bounds = array<i64: 256, 128>}, {pipeline_mode = #tpu.pipeline_mode<synchronous>, transform_indices = @transform_2, window_bounds = array<i64: 1, 128>}, {pipeline_mode = #tpu.pipeline_mode<synchronous>, transform_indices = @transform_3, window_bounds = array<i64: 1, 128>}, {pipeline_mode = #tpu.pipeline_mode<synchronous>, transform_indices = @transform_4, window_bounds = array<i64: 1, 128>}, {transform_indices = @transform_5, window_bounds = array<i64: 16, 128>}]} {
    %c0 = arith.constant 0 : index
    %c0_0 = arith.constant 0 : index
    %0 = vector.load %arg1[%c0, %c0_0] : memref<16x256xf32, #tpu.memory_space<vmem>>, vector<16x256xf32>
    %c0_1 = arith.constant 0 : index
    %c0_2 = arith.constant 0 : index
    %1 = vector.load %arg2[%c0_1, %c0_2] : memref<256x128xf32, #tpu.memory_space<vmem>>, vector<256x128xf32>
    %cst = arith.constant dense<0.000000e+00> : vector<16x128xf32>
    %2 = tpu.matmul %0, %1, %cst {dimension_numbers = #tpu.dot_dimension_numbers<[1], [0], [0], [1], [0, 0, 1, 1], [], []>} : vector<16x256xf32>, vector<256x128xf32>, vector<16x128xf32> -> vector<16x128xf32>
    %c0_3 = arith.constant 0 : index
    %c0_4 = arith.constant 0 : index
    %3 = vector.load %arg3[%c0_3, %c0_4] : memref<1x128xf32, #tpu.memory_space<vmem>>, vector<1x128xf32>
    %4 = vector.broadcast %3 : vector<1x128xf32> to vector<16x128xf32>
    %5 = arith.addf %2, %4 : vector<16x128xf32>
    %cst_5 = arith.constant dense<0.000000e+00> : vector<16xf32>
    %6 = vector.multi_reduction <add>, %5, %cst_5 [1] : vector<16x128xf32> to vector<16xf32>
    %7 = vector.shape_cast %6 : vector<16xf32> to vector<16x1xf32>
    %cst_6 = arith.constant 1.280000e+02 : f32
    %8 = vector.broadcast %cst_6 : f32 to vector<16x1xf32>
    %9 = arith.divf %7, %8 : vector<16x1xf32>
    %10 = vector.broadcast %9 : vector<16x1xf32> to vector<16x128xf32>
    %11 = arith.subf %5, %10 : vector<16x128xf32>
    %12 = arith.mulf %11, %11 : vector<16x128xf32>
    %cst_7 = arith.constant dense<0.000000e+00> : vector<16xf32>
    %13 = vector.multi_reduction <add>, %12, %cst_7 [1] : vector<16x128xf32> to vector<16xf32>
    %14 = vector.shape_cast %13 : vector<16xf32> to vector<16x1xf32>
    %cst_8 = arith.constant 1.280000e+02 : f32
    %15 = vector.broadcast %cst_8 : f32 to vector<16x1xf32>
    %16 = arith.divf %14, %15 : vector<16x1xf32>
    %cst_9 = arith.constant 9.99999996E-13 : f32
    %17 = vector.broadcast %cst_9 : f32 to vector<16x1xf32>
    %18 = arith.addf %16, %17 : vector<16x1xf32>
    %19 = math.rsqrt %18 : vector<16x1xf32>
    %20 = vector.broadcast %19 : vector<16x1xf32> to vector<16x128xf32>
    %21 = arith.mulf %11, %20 : vector<16x128xf32>
    %c0_10 = arith.constant 0 : index
    %c0_11 = arith.constant 0 : index
    %22 = vector.load %arg4[%c0_10, %c0_11] : memref<1x128xf32, #tpu.memory_space<vmem>>, vector<1x128xf32>
    %23 = vector.broadcast %22 : vector<1x128xf32> to vector<16x128xf32>
    %24 = arith.mulf %21, %23 : vector<16x128xf32>
    %c0_12 = arith.constant 0 : index
    %c0_13 = arith.constant 0 : index
    %25 = vector.load %arg5[%c0_12, %c0_13] : memref<1x128xf32, #tpu.memory_space<vmem>>, vector<1x128xf32>
    %26 = vector.broadcast %25 : vector<1x128xf32> to vector<16x128xf32>
    %27 = arith.addf %24, %26 : vector<16x128xf32>
    %c0_14 = arith.constant 0 : index
    %c0_15 = arith.constant 0 : index
    %28 = vector.load %arg6[%c0_14, %c0_15] : memref<16x128xf32, #tpu.memory_space<vmem>>, vector<16x128xf32>
    tpu.vector_store %arg6[%c0_14, %c0_15], %27 {strides = array<i32>} : memref<16x128xf32, #tpu.memory_space<vmem>>, vector<16x128xf32>,
    return
  }
  func.func @transform_0(%arg0: i32) -> (i32, i32) {
    %c0_i32 = arith.constant 0 : i32
    %c0_i32_0 = arith.constant 0 : i32
    return %arg0, %c0_i32 : i32, i32
  }
  func.func @transform_1(%arg0: i32) -> (i32, i32) {
    %c0_i32 = arith.constant 0 : i32
    %c0_i32_0 = arith.constant 0 : i32
    %c0_i32_1 = arith.constant 0 : i32
    return %c0_i32, %c0_i32_0 : i32, i32
  }
  func.func @transform_2(%arg0: i32) -> (i32, i32) {
    %c0_i32 = arith.constant 0 : i32
    %c0_i32_0 = arith.constant 0 : i32
    %c0_i32_1 = arith.constant 0 : i32
    return %c0_i32, %c0_i32_0 : i32, i32
  }
  func.func @transform_3(%arg0: i32) -> (i32, i32) {
    %c0_i32 = arith.constant 0 : i32
    %c0_i32_0 = arith.constant 0 : i32
    %c0_i32_1 = arith.constant 0 : i32
    return %c0_i32, %c0_i32_0 : i32, i32
  }
  func.func @transform_4(%arg0: i32) -> (i32, i32) {
    %c0_i32 = arith.constant 0 : i32
    %c0_i32_0 = arith.constant 0 : i32
    %c0_i32_1 = arith.constant 0 : i32
    return %c0_i32, %c0_i32_0 : i32, i32
  }
  func.func @transform_5(%arg0: i32) -> (i32, i32) {
    %c0_i32 = arith.constant 0 : i32
    %c0_i32_0 = arith.constant 0 : i32
    return %arg0, %c0_i32 : i32, i32
  }
}

</mosaic_0001>

<bundles_post_ra>
// kernel: tpu_custom_call.1
= control target key start
LH: loop header
LB: loop body
LE: loop exit
PB: predicated region body
PF: predicated region fallthrough
CT: control target
= control target key end

     0   :  { %10 = vsyncpa [#allocation3], 0  ;;  %s439_s0 = inlined_call_operand.hbm [shape: f32[16,256], index: 0, kind: input, shape index: {}]   ;;  %s440_s1 = inlined_call_operand.hbm [shape: f32[256,128], index: 1, kind: input, shape index: {}]   ;;  %s441_s2 = inlined_call_operand.vmem [shape: f32[1,128], index: 2, kind: input, shape index: {}]   ;;  %s442_s3 = inlined_call_operand.vmem [shape: f32[1,128], index: 3, kind: input, shape index: {}]   ;;  %s443_s4 = inlined_call_operand.vmem [shape: f32[1,128], index: 4, kind: input, shape index: {}]   ;;  %s444_s5 = inlined_call_operand.hbm [shape: f32[16,128], index: 5, kind: output, shape index: {}]  }
   0x1   :  { %11 = vsyncpa [#allocation6], 0 }
   0x2   :  { %12 = vsyncpa [#allocation4], 0  ;;  %s378_s18 = smov [#allocation2]  }
   0x3   :  { %s18_s19 = sshll.u32 %s378_s18, 4  ;;  %s19_s19 = int_to_ptr.vmem [resolvable:$true] %s18_s19 }
   0x4   :  { %s320_s20 = scalar_lea.vmem %s19_s19, 512  ;;  %p325_p1 = scmp.lt.s32.totalorder %s19_s19, %s19_s19 }
   0x5   :  { %p321_p0 = scmp.ne.s32.totalorder %s19_s19, %s320_s20  ;;  %p326_p2 = scmp.lt.s32.totalorder %s320_s20, %s320_s20 }
   0x7   :  { %p327_p3 = por %p326_p2, %p325_p1 }
   0x9   :  { %p328_p4 = pnand %p327_p3, %p321_p0 }
   0xb   :  { %331 = shalt.err (!%p328_p4)
}
   0xc   :  { %s379_s21 = smov 256   ;;  %s380_s22 = smov 16  }
   0xd   :  { %24 = dma.hbm_to_vmem [thread:$0]  %s439_s0, 512, %s19_s19, [#allocation3], %s379_s21, %s379_s21, %s380_s22  }
   0xe   :  { %s381_s25 = smov [#allocation5]  }
   0xf   :  { %s30_s26 = sshll.u32 %s381_s25, 4  ;;  %s31_s26 = int_to_ptr.vmem [resolvable:$true] %s30_s26 }
  0x10   :  { %s340_s27 = scalar_lea.vmem %s31_s26, 4096  ;;  %p345_p6 = scmp.lt.s32.totalorder %s31_s26, %s31_s26 }
  0x11   :  { %p341_p5 = scmp.ne.s32.totalorder %s31_s26, %s340_s27  ;;  %p346_p7 = scmp.lt.s32.totalorder %s340_s27, %s340_s27 }
  0x13   :  { %p347_p8 = por %p346_p7, %p345_p6 }
  0x15   :  { %p348_p9 = pnand %p347_p8, %p341_p5 }
  0x17   :  { %351 = shalt.err (!%p348_p9)
}
  0x18   :  { %s382_s28 = smov 128   ;;  %s383_s29 = smov 8  }
  0x19   :  { %36 = dma.hbm_to_vmem [thread:$0]  %s440_s1, 4096, %s31_s26, [#allocation6], %s382_s28, %s382_s28, %s383_s29  }
  0x1a   :  { %372 = dma.done.wait [#allocation3], 512  }
  0x1b   :  { %373 = vsyncadd [#allocation3], 4294966784 }
  0x1c   :  { %374 = dma.done.wait [#allocation6], 4096  }
  0x1d   :  { %375 = vsyncadd [#allocation6], 4294963200  ;;  %v84_v0 = vld [vmem:[#allocation5 + $0xf8] sm:$0xff]  ;;  %v83_v2 = vld [vmem:[#allocation5 + $0xf0] sm:$0xff]  ;;  %s384_s10 = smov [#allocation7]  }
  0x1e   :  { %v68_v1 = vld [vmem:[#allocation5 + $0x78] sm:$0xff]  ;;  %231 = vmatprep.subr.mxu0 %v84_v0  ;;  %269 = vmatprep.subr.mxu1 %v84_v0  ;;  %v67_v3 = vld [vmem:[#allocation5 + $0x70] sm:$0xff]  ;;  %v82_v4 = vld [vmem:[#allocation5 + $0xe8] sm:$0xff]  ;;  %s215_s11 = sshll.u32 %s384_s10, 4  ;;  %s216_s11 = int_to_ptr.vmem [resolvable:$true] %s215_s11 }
  0x1f   :  { %232 = vmatpush3.msra.mxu0 %v68_v1  ;;  %285 = vmatpush3.msra.mxu1 %v68_v1  ;;  %v66_v5 = vld [vmem:[#allocation5 + $0x68] sm:$0xff]  ;;  %v81_v6 = vld [vmem:[#allocation5 + $0xe0] sm:$0xff]  ;;  %v80_v8 = vld [vmem:[#allocation5 + $0xd8] sm:$0xff]  ;;  %s352_s12 = scalar_lea.vmem %s216_s11, 256  ;;  %p357_p11 = scmp.lt.s32.totalorder %s216_s11, %s216_s11 }
  0x20   :  { %233 = vmatprep.subr.mxu0 %v83_v2  ;;  %270 = vmatprep.subr.mxu1 %v83_v2  ;;  %v65_v7 = vld [vmem:[#allocation5 + $0x60] sm:$0xff]  ;;  %v64_v9 = vld [vmem:[#allocation5 + $0x58] sm:$0xff]  ;;  %v79_v10 = vld [vmem:[#allocation5 + $0xd0] sm:$0xff]  ;;  %p353_p10 = scmp.ne.s32.totalorder %s216_s11, %s352_s12  ;;  %p358_p12 = scmp.lt.s32.totalorder %s352_s12, %s352_s12 }
  0x21   :  { %234 = vmatpush3.msra.mxu0 %v67_v3  ;;  %286 = vmatpush3.msra.mxu1 %v67_v3  ;;  %v63_v11 = vld [vmem:[#allocation5 + $0x50] sm:$0xff]  ;;  %v78_v12 = vld [vmem:[#allocation5 + $0xc8] sm:$0xff]  ;;  %v77_v14 = vld [vmem:[#allocation5 + $0xc0] sm:$0xff] }
  0x22   :  { %235 = vmatprep.subr.mxu0 %v82_v4  ;;  %271 = vmatprep.subr.mxu1 %v82_v4  ;;  %v62_v13 = vld [vmem:[#allocation5 + $0x48] sm:$0xff]  ;;  %v61_v15 = vld [vmem:[#allocation5 + $0x40] sm:$0xff]  ;;  %v76_v16 = vld [vmem:[#allocation5 + $0xb8] sm:$0xff]  ;;  %p359_p13 = por %p358_p12, %p357_p11 }
  0x23   :  { %236 = vmatpush3.msra.mxu0 %v66_v5  ;;  %287 = vmatpush3.msra.mxu1 %v66_v5  ;;  %v60_v17 = vld [vmem:[#allocation5 + $0x38] sm:$0xff]  ;;  %v75_v18 = vld [vmem:[#allocation5 + $0xb0] sm:$0xff]  ;;  %v74_v20 = vld [vmem:[#allocation5 + $0xa8] sm:$0xff] }
  0x24   :  { %237 = vmatprep.subr.mxu0 %v81_v6  ;;  %272 = vmatprep.subr.mxu1 %v81_v6  ;;  %v59_v19 = vld [vmem:[#allocation5 + $0x30] sm:$0xff]  ;;  %v58_v21 = vld [vmem:[#allocation5 + $0x28] sm:$0xff]  ;;  %v73_v22 = vld [vmem:[#allocation5 + $0xa0] sm:$0xff]  ;;  %p360_p0 = pnand %p359_p13, %p353_p10 }
  0x25   :  { %238 = vmatpush3.msra.mxu0 %v65_v7  ;;  %288 = vmatpush3.msra.mxu1 %v65_v7  ;;  %v57_v23 = vld [vmem:[#allocation5 + $0x20] sm:$0xff]  ;;  %v72_v24 = vld [vmem:[#allocation5 + $0x98] sm:$0xff]  ;;  %v71_v26 = vld [vmem:[#allocation5 + $0x90] sm:$0xff] }
  0x26   :  { %239 = vmatprep.subr.mxu0 %v80_v8  ;;  %273 = vmatprep.subr.mxu1 %v80_v8  ;;  %v56_v25 = vld [vmem:[#allocation5 + $0x18] sm:$0xff]  ;;  %v55_v27 = vld [vmem:[#allocation5 + $0x10] sm:$0xff]  ;;  %v70_v28 = vld [vmem:[#allocation5 + $0x88] sm:$0xff] }
  0x27   :  { %240 = vmatpush3.msra.mxu0 %v64_v9  ;;  %289 = vmatpush3.msra.mxu1 %v64_v9  ;;  %v54_v29 = vld [vmem:[#allocation5 + $0x8] sm:$0xff]  ;;  %v69_v30 = vld [vmem:[#allocation5 + $0x80] sm:$0xff]  ;;  %v52_v34 = vld [vmem:[#allocation2 + $0x18] sm:$0xff] }
  0x28   :  { %241 = vmatprep.subr.mxu0 %v79_v10  ;;  %274 = vmatprep.subr.mxu1 %v79_v10  ;;  %v50_v31 = vld [vmem:[#allocation2 + $0x8] sm:$0xff]  ;;  %v53_v32 = vld [vmem:[#allocation5] sm:$0xff]  ;;  %v51_v35 = vld [vmem:[#allocation2 + $0x10] sm:$0xff] }
  0x29   :  { %242 = vmatpush3.msra.mxu0 %v63_v11  ;;  %290 = vmatpush3.msra.mxu1 %v63_v11  ;;  %v49_v33 = vld [vmem:[#allocation2] sm:$0xff] }
  0x2a   :  { %243 = vmatprep.subr.mxu0 %v78_v12  ;;  %275 = vmatprep.subr.mxu1 %v78_v12  ;;  %v228_v39 = vld [vmem:[%s441_s2] ss:$0 sm:$0xff] }
  0x2b   :  { %244 = vmatpush3.msra.mxu0 %v62_v13  ;;  %291 = vmatpush3.msra.mxu1 %v62_v13  ;;  %v229_v60 = vld [vmem:[%s442_s3] ss:$0 sm:$0xff] }
  0x2c   :  { %245 = vmatprep.subr.mxu0 %v77_v14  ;;  %276 = vmatprep.subr.mxu1 %v77_v14  ;;  %v230_v62 = vld [vmem:[%s443_s4] ss:$0 sm:$0xff] }
  0x2d   :  { %246 = vmatpush3.msra.mxu0 %v61_v15  ;;  %292 = vmatpush3.msra.mxu1 %v61_v15 }
  0x2e   :  { %247 = vmatprep.subr.mxu0 %v76_v16  ;;  %277 = vmatprep.subr.mxu1 %v76_v16 }
  0x2f   :  { %248 = vmatpush3.msra.mxu0 %v60_v17  ;;  %293 = vmatpush3.msra.mxu1 %v60_v17 }
  0x30   :  { %249 = vmatprep.subr.mxu0 %v75_v18  ;;  %278 = vmatprep.subr.mxu1 %v75_v18 }
  0x31   :  { %250 = vmatpush3.msra.mxu0 %v59_v19  ;;  %294 = vmatpush3.msra.mxu1 %v59_v19 }
  0x32   :  { %251 = vmatprep.subr.mxu0 %v74_v20  ;;  %279 = vmatprep.subr.mxu1 %v74_v20 }
  0x33   :  { %252 = vmatpush3.msra.mxu0 %v58_v21  ;;  %295 = vmatpush3.msra.mxu1 %v58_v21 }
  0x34   :  { %253 = vmatprep.subr.mxu0 %v73_v22  ;;  %280 = vmatprep.subr.mxu1 %v73_v22 }
  0x35   :  { %254 = vmatpush3.msra.mxu0 %v57_v23  ;;  %296 = vmatpush3.msra.mxu1 %v57_v23 }
  0x36   :  { %255 = vmatprep.subr.mxu0 %v72_v24  ;;  %281 = vmatprep.subr.mxu1 %v72_v24 }
  0x37   :  { %256 = vmatpush3.msra.mxu0 %v56_v25  ;;  %297 = vmatpush3.msra.mxu1 %v56_v25 }
  0x38   :  { %257 = vmatprep.subr.mxu0 %v71_v26  ;;  %282 = vmatprep.subr.mxu1 %v71_v26 }
  0x39   :  { %258 = vmatpush3.msra.mxu0 %v55_v27  ;;  %298 = vmatpush3.msra.mxu1 %v55_v27 }
  0x3a   :  { %259 = vmatprep.subr.mxu0 %v70_v28  ;;  %283 = vmatprep.subr.mxu1 %v70_v28 }
  0x3b   :  { %260 = vmatpush3.msra.mxu0 %v54_v29  ;;  %299 = vmatpush3.msra.mxu1 %v54_v29 }
  0x3c   :  { %261 = vmatprep.subr.mxu0 %v69_v30  ;;  %156 = vmatprep.mubr.f32.mxu0 %v50_v31 }
  0x3d   :  { %262 = vmatpush3.msra.mxu0 %v53_v32  ;;  %284 = vmatprep.subr.mxu1 %v69_v30 }
  0x3e   :  { %157 = vmatmul.mubr.f32.vlgmr.msra.gmra.mxu0 %v49_v33  ;;  %300 = vmatpush3.msra.mxu1 %v53_v32 }
  0x3f   :  { %161 = vmatprep.mubr.f32.mxu1 %v52_v34 }
  0x40   :  { %162 = vmatmul.mubr.f32.vlgmr.msra.gmra.mxu1 %v51_v35 }
  0xfe   :  { %v263_v36 = vpop.f32.mrf.mxu0 }
 0x100   :  { %v264_v37 = vpop.f32.mrf.mxu0  ;;  %v266_v38 = vpop.f32.mrf.mxu1 }
 0x101   :  { %v265_v40 = vadd.f32 %v264_v37, %v263_v36 }
 0x102   :  { %v267_v41 = vpop.f32.mrf.mxu1 }
 0x103   :  { %v268_v42 = vadd.f32 %v267_v41, %v266_v38  ;;  %v159_v43 = vadd.f32 %v265_v40, %v228_v39 }
 0x105   :  { %167 = vadd.xlane.f32.xlu0 %v159_v43  ;;  %v164_v44 = vadd.f32 %v268_v42, %v228_v39 }
 0x109   :  { %169 = vadd.xlane.f32.xlu0 %v164_v44 }
 0x18e   :  { %v168_v45 = vpop.xlane.xlu0 %167 }
 0x18f   :  { %v172_v46 = vmul.f32 0.0078125, %v168_v45 }
 0x191   :  { %v174_v47 = vsub.f32 %v159_v43, %v172_v46 }
 0x192   :  { %v170_v48 = vpop.xlane.xlu0 %169 }
 0x193   :  { %v173_v49 = vmul.f32 0.0078125, %v170_v48  ;;  %v176_v50 = vmul.f32 %v174_v47, %v174_v47 }
 0x195   :  { %v175_v51 = vsub.f32 %v164_v44, %v173_v49  ;;  %178 = vadd.xlane.f32.xlu1 %v176_v50 }
 0x197   :  { %v177_v52 = vmul.f32 %v175_v51, %v175_v51 }
 0x199   :  { %180 = vadd.xlane.f32.xlu1 %v177_v52 }
 0x21e   :  { %v179_v53 = vpop.xlane.xlu1 %178 }
 0x21f   :  { %v182_v54 = vmul.f32 0.0078125, %v179_v53 }
 0x221   :  { %v184_v55 = vadd.f32 1e-12, %v182_v54 }
 0x222   :  { %v181_v56 = vpop.xlane.xlu1 %180 }
 0x223   :  { %308 = vrsqrt.f32 %v184_v55  ;;  %v183_v57 = vmul.f32 0.0078125, %v181_v56 }
 0x225   :  { %v185_v58 = vadd.f32 1e-12, %v183_v57 }
 0x227   :  { %310 = vrsqrt.f32 %v185_v58 }
 0x230   :  { %v309_v59 = vpop.eup %308 }
 0x231   :  { %v188_v61 = vmul.f32 %v309_v59, %v174_v47 }
 0x233   :  { %v197_v63 = vmul.f32 %v229_v60, %v188_v61 }
 0x234   :  { %v311_v0 = vpop.eup %310 }
 0x235   :  { %v189_v1 = vmul.f32 %v311_v0, %v175_v51  ;;  %v206_v2 = vadd.f32 %v230_v62, %v197_v63 }
 0x237   :  { %v198_v3 = vmul.f32 %v229_v60, %v189_v1  ;;  %208 = vst [vmem:[#allocation7] sm:$0xff] %v206_v2 }
 0x239   :  { %v207_v4 = vadd.f32 %v230_v62, %v198_v3 }
 0x23b   :  { %209 = vst [vmem:[#allocation7 + $0x8] sm:$0xff] %v207_v4 }
 0x23c   :  { %363 = shalt.err (!%p360_p0)
}
 0x23d   :  { %221 = dma.vmem_to_hbm [thread:$0]  %s216_s11, 256, %s444_s5, [#allocation4], %s382_s28, %s382_s28, %s383_s29  }
 0x23e   :  { %376 = dma.done.wait [#allocation4], 256  }
 0x23f   :  { %377 = vsyncadd [#allocation4], 4294967040 }
 0x240   :  { %225 = vsyncpa [#allocation3], 1 }
 0x241   :  { %226 = vsyncpa [#allocation6], 1 }
 0x242   :  { %227 = vsyncpa [#allocation4], 1 }

// kernel: tpu_custom_call.1
= control target key start
LH: loop header
LB: loop body
LE: loop exit
PB: predicated region body
PF: predicated region fallthrough
CT: control target
= control target key end

     0   :  { %10 = vsyncpa [#allocation3], 0  ;;  %s439_s0 = inlined_call_operand.hbm [shape: f32[16,256], index: 0, kind: input, shape index: {}]   ;;  %s440_s1 = inlined_call_operand.hbm [shape: f32[256,128], index: 1, kind: input, shape index: {}]   ;;  %s441_s2 = inlined_call_operand.vmem [shape: f32[1,128], index: 2, kind: input, shape index: {}]   ;;  %s442_s3 = inlined_call_operand.vmem [shape: f32[1,128], index: 3, kind: input, shape index: {}]   ;;  %s443_s4 = inlined_call_operand.vmem [shape: f32[1,128], index: 4, kind: input, shape index: {}]   ;;  %s444_s5 = inlined_call_operand.hbm [shape: f32[16,128], index: 5, kind: output, shape index: {}]  }
   0x1   :  { %11 = vsyncpa [#allocation6], 0 }
   0x2   :  { %12 = vsyncpa [#allocation4], 0  ;;  %s378_s18 = smov [#allocation2]  }
   0x3   :  { %s18_s19 = sshll.u32 %s378_s18, 4  ;;  %s19_s19 = int_to_ptr.vmem [resolvable:$true] %s18_s19 }
   0x4   :  { %s320_s20 = scalar_lea.vmem %s19_s19, 512  ;;  %p325_p1 = scmp.lt.s32.totalorder %s19_s19, %s19_s19 }
   0x5   :  { %p321_p0 = scmp.ne.s32.totalorder %s19_s19, %s320_s20  ;;  %p326_p2 = scmp.lt.s32.totalorder %s320_s20, %s320_s20 }
   0x7   :  { %p327_p3 = por %p326_p2, %p325_p1 }
   0x9   :  { %p328_p4 = pnand %p327_p3, %p321_p0 }
   0xb   :  { %331 = shalt.err (!%p328_p4)
}
   0xc   :  { %s379_s21 = smov 256   ;;  %s380_s22 = smov 16  }
   0xd   :  { %24 = dma.hbm_to_vmem [thread:$0]  %s439_s0, 512, %s19_s19, [#allocation3], %s379_s21, %s379_s21, %s380_s22  }
   0xe   :  { %s381_s25 = smov [#allocation5]  }
   0xf   :  { %s30_s26 = sshll.u32 %s381_s25, 4  ;;  %s31_s26 = int_to_ptr.vmem [resolvable:$true] %s30_s26 }
  0x10   :  { %s340_s27 = scalar_lea.vmem %s31_s26, 4096  ;;  %p345_p6 = scmp.lt.s32.totalorder %s31_s26, %s31_s26 }
  0x11   :  { %p341_p5 = scmp.ne.s32.totalorder %s31_s26, %s340_s27  ;;  %p346_p7 = scmp.lt.s32.totalorder %s340_s27, %s340_s27 }
  0x13   :  { %p347_p8 = por %p346_p7, %p345_p6 }
  0x15   :  { %p348_p9 = pnand %p347_p8, %p341_p5 }
  0x17   :  { %351 = shalt.err (!%p348_p9)
}
  0x18   :  { %s382_s28 = smov 128   ;;  %s383_s29 = smov 8  }
  0x19   :  { %36 = dma.hbm_to_vmem [thread:$0]  %s440_s1, 4096, %s31_s26, [#allocation6], %s382_s28, %s382_s28, %s383_s29  }
  0x1a   :  { %372 = dma.done.wait [#allocation3], 512  }
  0x1b   :  { %373 = vsyncadd [#allocation3], 4294966784 }
  0x1c   :  { %374 = dma.done.wait [#allocation6], 4096  }
  0x1d   :  { %375 = vsyncadd [#allocation6], 4294963200  ;;  %v84_v0 = vld [vmem:[#allocation5 + $0xf8] sm:$0xff]  ;;  %v83_v2 = vld [vmem:[#allocation5 + $0xf0] sm:$0xff]  ;;  %s384_s10 = smov [#allocation7]  }
  0x1e   :  { %v68_v1 = vld [vmem:[#allocation5 + $0x78] sm:$0xff]  ;;  %231 = vmatprep.subr.mxu0 %v84_v0  ;;  %269 = vmatprep.subr.mxu1 %v84_v0  ;;  %v67_v3 = vld [vmem:[#allocation5 + $0x70] sm:$0xff]  ;;  %v82_v4 = vld [vmem:[#allocation5 + $0xe8] sm:$0xff]  ;;  %s215_s11 = sshll.u32 %s384_s10, 4  ;;  %s216_s11 = int_to_ptr.vmem [resolvable:$true] %s215_s11 }
  0x1f   :  { %232 = vmatpush3.msra.mxu0 %v68_v1  ;;  %285 = vmatpush3.msra.mxu1 %v68_v1  ;;  %v66_v5 = vld [vmem:[#allocation5 + $0x68] sm:$0xff]  ;;  %v81_v6 = vld [vmem:[#allocation5 + $0xe0] sm:$0xff]  ;;  %v80_v8 = vld [vmem:[#allocation5 + $0xd8] sm:$0xff]  ;;  %s352_s12 = scalar_lea.vmem %s216_s11, 256  ;;  %p357_p11 = scmp.lt.s32.totalorder %s216_s11, %s216_s11 }
  0x20   :  { %233 = vmatprep.subr.mxu0 %v83_v2  ;;  %270 = vmatprep.subr.mxu1 %v83_v2  ;;  %v65_v7 = vld [vmem:[#allocation5 + $0x60] sm:$0xff]  ;;  %v64_v9 = vld [vmem:[#allocation5 + $0x58] sm:$0xff]  ;;  %v79_v10 = vld [vmem:[#allocation5 + $0xd0] sm:$0xff]  ;;  %p353_p10 = scmp.ne.s32.totalorder %s216_s11, %s352_s12  ;;  %p358_p12 = scmp.lt.s32.totalorder %s352_s12, %s352_s12 }
  0x21   :  { %234 = vmatpush3.msra.mxu0 %v67_v3  ;;  %286 = vmatpush3.msra.mxu1 %v67_v3  ;;  %v63_v11 = vld [vmem:[#allocation5 + $0x50] sm:$0xff]  ;;  %v78_v12 = vld [vmem:[#allocation5 + $0xc8] sm:$0xff]  ;;  %v77_v14 = vld [vmem:[#allocation5 + $0xc0] sm:$0xff] }
  0x22   :  { %235 = vmatprep.subr.mxu0 %v82_v4  ;;  %271 = vmatprep.subr.mxu1 %v82_v4  ;;  %v62_v13 = vld [vmem:[#allocation5 + $0x48] sm:$0xff]  ;;  %v61_v15 = vld [vmem:[#allocation5 + $0x40] sm:$0xff]  ;;  %v76_v16 = vld [vmem:[#allocation5 + $0xb8] sm:$0xff]  ;;  %p359_p13 = por %p358_p12, %p357_p11 }
  0x23   :  { %236 = vmatpush3.msra.mxu0 %v66_v5  ;;  %287 = vmatpush3.msra.mxu1 %v66_v5  ;;  %v60_v17 = vld [vmem:[#allocation5 + $0x38] sm:$0xff]  ;;  %v75_v18 = vld [vmem:[#allocation5 + $0xb0] sm:$0xff]  ;;  %v74_v20 = vld [vmem:[#allocation5 + $0xa8] sm:$0xff] }
  0x24   :  { %237 = vmatprep.subr.mxu0 %v81_v6  ;;  %272 = vmatprep.subr.mxu1 %v81_v6  ;;  %v59_v19 = vld [vmem:[#allocation5 + $0x30] sm:$0xff]  ;;  %v58_v21 = vld [vmem:[#allocation5 + $0x28] sm:$0xff]  ;;  %v73_v22 = vld [vmem:[#allocation5 + $0xa0] sm:$0xff]  ;;  %p360_p0 = pnand %p359_p13, %p353_p10 }
  0x25   :  { %238 = vmatpush3.msra.mxu0 %v65_v7  ;;  %288 = vmatpush3.msra.mxu1 %v65_v7  ;;  %v57_v23 = vld [vmem:[#allocation5 + $0x20] sm:$0xff]  ;;  %v72_v24 = vld [vmem:[#allocation5 + $0x98] sm:$0xff]  ;;  %v71_v26 = vld [vmem:[#allocation5 + $0x90] sm:$0xff] }
  0x26   :  { %239 = vmatprep.subr.mxu0 %v80_v8  ;;  %273 = vmatprep.subr.mxu1 %v80_v8  ;;  %v56_v25 = vld [vmem:[#allocation5 + $0x18] sm:$0xff]  ;;  %v55_v27 = vld [vmem:[#allocation5 + $0x10] sm:$0xff]  ;;  %v70_v28 = vld [vmem:[#allocation5 + $0x88] sm:$0xff] }
  0x27   :  { %240 = vmatpush3.msra.mxu0 %v64_v9  ;;  %289 = vmatpush3.msra.mxu1 %v64_v9  ;;  %v54_v29 = vld [vmem:[#allocation5 + $0x8] sm:$0xff]  ;;  %v69_v30 = vld [vmem:[#allocation5 + $0x80] sm:$0xff]  ;;  %v52_v34 = vld [vmem:[#allocation2 + $0x18] sm:$0xff] }
  0x28   :  { %241 = vmatprep.subr.mxu0 %v79_v10  ;;  %274 = vmatprep.subr.mxu1 %v79_v10  ;;  %v50_v31 = vld [vmem:[#allocation2 + $0x8] sm:$0xff]  ;;  %v53_v32 = vld [vmem:[#allocation5] sm:$0xff]  ;;  %v51_v35 = vld [vmem:[#allocation2 + $0x10] sm:$0xff] }
  0x29   :  { %242 = vmatpush3.msra.mxu0 %v63_v11  ;;  %290 = vmatpush3.msra.mxu1 %v63_v11  ;;  %v49_v33 = vld [vmem:[#allocation2] sm:$0xff] }
  0x2a   :  { %243 = vmatprep.subr.mxu0 %v78_v12  ;;  %275 = vmatprep.subr.mxu1 %v78_v12  ;;  %v228_v39 = vld [vmem:[%s441_s2] ss:$0 sm:$0xff] }
  0x2b   :  { %244 = vmatpush3.msra.mxu0 %v62_v13  ;;  %291 = vmatpush3.msra.mxu1 %v62_v13  ;;  %v229_v60 = vld [vmem:[%s442_s3] ss:$0 sm:$0xff] }
  0x2c   :  { %245 = vmatprep.subr.mxu0 %v77_v14  ;;  %276 = vmatprep.subr.mxu1 %v77_v14  ;;  %v230_v62 = vld [vmem:[%s443_s4] ss:$0 sm:$0xff] }
  0x2d   :  { %246 = vmatpush3.msra.mxu0 %v61_v15  ;;  %292 = vmatpush3.msra.mxu1 %v61_v15 }
  0x2e   :  { %247 = vmatprep.subr.mxu0 %v76_v16  ;;  %277 = vmatprep.subr.mxu1 %v76_v16 }
  0x2f   :  { %248 = vmatpush3.msra.mxu0 %v60_v17  ;;  %293 = vmatpush3.msra.mxu1 %v60_v17 }
  0x30   :  { %249 = vmatprep.subr.mxu0 %v75_v18  ;;  %278 = vmatprep.subr.mxu1 %v75_v18 }
  0x31   :  { %250 = vmatpush3.msra.mxu0 %v59_v19  ;;  %294 = vmatpush3.msra.mxu1 %v59_v19 }
  0x32   :  { %251 = vmatprep.subr.mxu0 %v74_v20  ;;  %279 = vmatprep.subr.mxu1 %v74_v20 }
  0x33   :  { %252 = vmatpush3.msra.mxu0 %v58_v21  ;;  %295 = vmatpush3.msra.mxu1 %v58_v21 }
  0x34   :  { %253 = vmatprep.subr.mxu0 %v73_v22  ;;  %280 = vmatprep.subr.mxu1 %v73_v22 }
  0x35   :  { %254 = vmatpush3.msra.mxu0 %v57_v23  ;;  %296 = vmatpush3.msra.mxu1 %v57_v23 }
  0x36   :  { %255 = vmatprep.subr.mxu0 %v72_v24  ;;  %281 = vmatprep.subr.mxu1 %v72_v24 }
  0x37   :  { %256 = vmatpush3.msra.mxu0 %v56_v25  ;;  %297 = vmatpush3.msra.mxu1 %v56_v25 }
  0x38   :  { %257 = vmatprep.subr.mxu0 %v71_v26  ;;  %282 = vmatprep.subr.mxu1 %v71_v26 }
  0x39   :  { %258 = vmatpush3.msra.mxu0 %v55_v27  ;;  %298 = vmatpush3.msra.mxu1 %v55_v27 }
  0x3a   :  { %259 = vmatprep.subr.mxu0 %v70_v28  ;;  %283 = vmatprep.subr.mxu1 %v70_v28 }
  0x3b   :  { %260 = vmatpush3.msra.mxu0 %v54_v29  ;;  %299 = vmatpush3.msra.mxu1 %v54_v29 }
  0x3c   :  { %261 = vmatprep.subr.mxu0 %v69_v30  ;;  %156 = vmatprep.mubr.f32.mxu0 %v50_v31 }
  0x3d   :  { %262 = vmatpush3.msra.mxu0 %v53_v32  ;;  %284 = vmatprep.subr.mxu1 %v69_v30 }
  0x3e   :  { %157 = vmatmul.mubr.f32.vlgmr.msra.gmra.mxu0 %v49_v33  ;;  %300 = vmatpush3.msra.mxu1 %v53_v32 }
  0x3f   :  { %161 = vmatprep.mubr.f32.mxu1 %v52_v34 }
  0x40   :  { %162 = vmatmul.mubr.f32.vlgmr.msra.gmra.mxu1 %v51_v35 }
  0xfe   :  { %v263_v36 = vpop.f32.mrf.mxu0 }
 0x100   :  { %v264_v37 = vpop.f32.mrf.mxu0  ;;  %v266_v38 = vpop.f32.mrf.mxu1 }
 0x101   :  { %v265_v40 = vadd.f32 %v264_v37, %v263_v36 }
 0x102   :  { %v267_v41 = vpop.f32.mrf.mxu1 }
 0x103   :  { %v268_v42 = vadd.f32 %v267_v41, %v266_v38  ;;  %v159_v43 = vadd.f32 %v265_v40, %v228_v39 }
 0x105   :  { %167 = vadd.xlane.f32.xlu0 %v159_v43  ;;  %v164_v44 = vadd.f32 %v268_v42, %v228_v39 }
 0x109   :  { %169 = vadd.xlane.f32.xlu0 %v164_v44 }
 0x18e   :  { %v168_v45 = vpop.xlane.xlu0 %167 }
 0x18f   :  { %v172_v46 = vmul.f32 0.0078125, %v168_v45 }
 0x191   :  { %v174_v47 = vsub.f32 %v159_v43, %v172_v46 }
 0x192   :  { %v170_v48 = vpop.xlane.xlu0 %169 }
 0x193   :  { %v173_v49 = vmul.f32 0.0078125, %v170_v48  ;;  %v176_v50 = vmul.f32 %v174_v47, %v174_v47 }
 0x195   :  { %v175_v51 = vsub.f32 %v164_v44, %v173_v49  ;;  %178 = vadd.xlane.f32.xlu1 %v176_v50 }
 0x197   :  { %v177_v52 = vmul.f32 %v175_v51, %v175_v51 }
 0x199   :  { %180 = vadd.xlane.f32.xlu1 %v177_v52 }
 0x21e   :  { %v179_v53 = vpop.xlane.xlu1 %178 }
 0x21f   :  { %v182_v54 = vmul.f32 0.0078125, %v179_v53 }
 0x221   :  { %v184_v55 = vadd.f32 1e-12, %v182_v54 }
 0x222   :  { %v181_v56 = vpop.xlane.xlu1 %180 }
 0x223   :  { %308 = vrsqrt.f32 %v184_v55  ;;  %v183_v57 = vmul.f32 0.0078125, %v181_v56 }
 0x225   :  { %v185_v58 = vadd.f32 1e-12, %v183_v57 }
 0x227   :  { %310 = vrsqrt.f32 %v185_v58 }
 0x230   :  { %v309_v59 = vpop.eup %308 }
 0x231   :  { %v188_v61 = vmul.f32 %v309_v59, %v174_v47 }
 0x233   :  { %v197_v63 = vmul.f32 %v229_v60, %v188_v61 }
 0x234   :  { %v311_v0 = vpop.eup %310 }
 0x235   :  { %v189_v1 = vmul.f32 %v311_v0, %v175_v51  ;;  %v206_v2 = vadd.f32 %v230_v62, %v197_v63 }
 0x237   :  { %v198_v3 = vmul.f32 %v229_v60, %v189_v1  ;;  %208 = vst [vmem:[#allocation7] sm:$0xff] %v206_v2 }
 0x239   :  { %v207_v4 = vadd.f32 %v230_v62, %v198_v3 }
 0x23b   :  { %209 = vst [vmem:[#allocation7 + $0x8] sm:$0xff] %v207_v4 }
 0x23c   :  { %363 = shalt.err (!%p360_p0)
}
 0x23d   :  { %221 = dma.vmem_to_hbm [thread:$0]  %s216_s11, 256, %s444_s5, [#allocation4], %s382_s28, %s382_s28, %s383_s29  }
 0x23e   :  { %376 = dma.done.wait [#allocation4], 256  }
 0x23f   :  { %377 = vsyncadd [#allocation4], 4294967040 }
 0x240   :  { %225 = vsyncpa [#allocation3], 1 }
 0x241   :  { %226 = vsyncpa [#allocation6], 1 }
 0x242   :  { %227 = vsyncpa [#allocation4], 1 }

</bundles_post_ra>
